<compile_context>
chip_gen: v7x
topology: tpu7x:2x2x1
jax: 0.10.0
libtpu: 0.0.40
codegen_flags: <defaults>
</compile_context>

<pallas_src>
import functools
import math

import numpy as np
import jax
import jax.numpy as jnp
from jax.experimental import pallas as pl
from jax.experimental.pallas import tpu as pltpu

GROUPS = 32
GN_EPS = 1e-5
MXU_DTYPE = jnp.bfloat16


# ----------------------------------------------------------------------------
# In-kernel helpers (pure functions on VMEM-resident values)
# ----------------------------------------------------------------------------
def _gn_relu(x, gamma, beta, mm, n, mask):
    """Two-pass GroupNorm (biased var) + ReLU.

    x: (P, C) f32, zero at every non-interior row when mask is not None.
    gamma/beta: (1, C).  mm: (C, C) block-diagonal ones (group membership).
    n: elements per group (= H*W*group_size).  mask: (P, 1) or None.
    """
    s = jnp.sum(x, axis=0, keepdims=True)                              # (1, C)
    mean = jnp.dot(s, mm, preferred_element_type=jnp.float32) / n      # (1, C)
    d = x - mean
    dm = d * mask if mask is not None else d
    ssd = jnp.sum(dm * dm, axis=0, keepdims=True)                      # (1, C)
    var = jnp.dot(ssd, mm, preferred_element_type=jnp.float32) / n
    inv = jax.lax.rsqrt(var + GN_EPS)
    y = jnp.maximum(d * inv * gamma + beta, 0.0)
    if mask is not None:
        y = y * mask
    return y


def _conv3x3(y, w_ref, Wp):
    """3x3 / stride-1 conv on a flat, zero-bordered activation buffer.

    y: (S, Cin) f32 where the image frame is laid out row-major with padded
       row stride Wp and everything outside the frame interior is zero.
    w_ref: (9*Cin, Cout) bf16.
    Returns (S - 2*(Wp+1), Cout) f32; output row q corresponds to buffer
    position q + (Wp+1).
    """
    D = Wp + 1
    lout = y.shape[0] - 2 * D
    cin = y.shape[1]
    offs = [dr * Wp + dc for dr in (-1, 0, 1) for dc in (-1, 0, 1)]
    w = w_ref[...]
    if cin % 128 == 0:
        # im2col in VMEM: single matmul with K = 9*Cin (lane-aligned concat).
        lhs = jnp.concatenate([y[D + o: D + o + lout, :] for o in offs], axis=1)
        return jnp.dot(lhs.astype(MXU_DTYPE), w,
                       preferred_element_type=jnp.float32)
    # Small channel counts: per-tap accumulate (K = Cin), proven lowering.
    acc = jnp.zeros((lout, w.shape[1]), jnp.float32)
    for t, o in enumerate(offs):
        acc = acc + jnp.dot(y[D + o: D + o + lout, :].astype(MXU_DTYPE),
                            w[t * cin:(t + 1) * cin, :],
                            preferred_element_type=jnp.float32)
    return acc


# ----------------------------------------------------------------------------
# Pallas kernels
# ----------------------------------------------------------------------------
def _stem_kernel(p_ref, w_ref, b_ref, g_ref, be_ref, mm_ref, o_ref, *, n):
    """7x7 / stride-2 conv (pre-gathered stride-2 patches) + GN + ReLU."""
    t = jnp.dot(p_ref[0].astype(MXU_DTYPE), w_ref[...],
                preferred_element_type=jnp.float32) + b_ref[...]
    o_ref[0] = _gn_relu(t, g_ref[...], be_ref[...], mm_ref[...], n, None)


def _convblock_kernel(*refs, H, W, n1, n2, n3, has_down):
    """Fully fused ConvBlock: (GN+ReLU+conv3x3) x3, channel concat, residual."""
    if has_down:
        (x_ref, mask_ref,
         g1, b1, mm1, w1,
         g2, b2, mm2, w2,
         g3, b3, mm3, w3,
         e1, e2, e3,
         g4, b4, wd, o_ref) = refs
    else:
        (x_ref, mask_ref,
         g1, b1, mm1, w1,
         g2, b2, mm2, w2,
         g3, b3, mm3, w3,
         e1, e2, e3, o_ref) = refs

    Wp = W + 2
    D = Wp + 1
    F = (H + 2) * Wp

    x = x_ref[0]                     # (F + 6D, Cin), zero outside interior
    m0 = mask_ref[...]               # (F + 6D, 1) interior mask

    y1 = _gn_relu(x, g1[...], b1[...], mm1[...], n1, m0)
    r1 = _conv3x3(y1, w1, Wp)                        # (F + 4D, C2)
    m1 = m0[D:D + r1.shape[0], :]
    o1 = r1 * m1

    y2 = _gn_relu(o1, g2[...], b2[...], mm2[...], n2, m1)
    r2 = _conv3x3(y2, w2, Wp)                        # (F + 2D, C4)
    m2 = m0[2 * D:2 * D + r2.shape[0], :]
    o2 = r2 * m2

    y3 = _gn_relu(o2, g3[...], b3[...], mm3[...], n3, m2)
    r3 = _conv3x3(y3, w3, Wp)                        # (F, C4)
    m3 = m0[3 * D:3 * D + F, :]
    o3 = r3 * m3

    if has_down:
        y4 = _gn_relu(x, g4[...], b4[...], mm1[...], n1, m0)
        res = jnp.dot(y4[3 * D:3 * D + F, :].astype(MXU_DTYPE), wd[...],
                      preferred_element_type=jnp.float32)
    else:
        res = x[3 * D:3 * D + F, :]

    # Channel placement of the three conv outputs into one lane-dense output
    # (tiny 0/1 matmuls instead of unaligned lane concatenation) + residual.
    out = (jnp.dot(o1[2 * D:2 * D + F, :], e1[...],
                   preferred_element_type=jnp.float32)
           + jnp.dot(o2[D:D + F, :], e2[...],
                     preferred_element_type=jnp.float32)
           + jnp.dot(o3, e3[...], preferred_element_type=jnp.float32)
           + res)
    o_ref[0] = out


def _pw_kernel(*refs, n, has_gn):
    """1x1 conv (+ bias) with an optional fused GroupNorm + ReLU epilogue."""
    if has_gn:
        x_ref, mask_ref, w_ref, b_ref, g_ref, be_ref, mm_ref, o_ref = refs
    else:
        x_ref, mask_ref, w_ref, b_ref, o_ref = refs
    mask = mask_ref[...]
    t = (jnp.dot(x_ref[0].astype(MXU_DTYPE), w_ref[...],
                 preferred_element_type=jnp.float32) + b_ref[...]) * mask
    if has_gn:
        t = _gn_relu(t, g_ref[...], be_ref[...], mm_ref[...], n, mask)
    o_ref[0] = t


# ----------------------------------------------------------------------------
# Cached constants and pallas_call builders
# ----------------------------------------------------------------------------
def _full_spec(shape):
    return pl.BlockSpec(shape, lambda *args: (0,) * len(shape))


@functools.lru_cache(maxsize=None)
def _interior_mask(H, W, slack):
    m = np.zeros((H + 2, W + 2), np.float32)
    m[1:H + 1, 1:W + 1] = 1.0
    m = m.reshape(-1, 1)
    if slack:
        z = np.zeros((slack, 1), np.float32)
        m = np.concatenate([z, m, z], axis=0)
    return jnp.asarray(m)


@functools.lru_cache(maxsize=None)
def _group_block(C, groups=GROUPS):
    gs = C // groups
    mm = np.zeros((C, C), np.float32)
    for g in range(groups):
        mm[g * gs:(g + 1) * gs, g * gs:(g + 1) * gs] = 1.0
    return jnp.asarray(mm)


@functools.lru_cache(maxsize=None)
def _placement(offset, width, total):
    m = np.zeros((width, total), np.float32)
    m[np.arange(width), offset + np.arange(width)] = 1.0
    return jnp.asarray(m)


@functools.lru_cache(maxsize=None)
def _build_stem(B, HW, K, C):
    n = float(HW * (C // GROUPS))
    kernel = functools.partial(_stem_kernel, n=n)
    fn = pl.pallas_call(
        kernel,
        out_shape=jax.ShapeDtypeStruct((B, HW, C), jnp.float32),
        grid=(B,),
        in_specs=[
            pl.BlockSpec((1, HW, K), lambda b: (b, 0, 0)),
            _full_spec((K, C)), _full_spec((1, C)),
            _full_spec((1, C)), _full_spec((1, C)), _full_spec((C, C)),
        ],
        out_specs=pl.BlockSpec((1, HW, C), lambda b: (b, 0, 0)),
        compiler_params=pltpu.CompilerParams(dimension_semantics=("parallel",)),
    )
    return jax.jit(fn)


@functools.lru_cache(maxsize=None)
def _build_convblock(B, H, W, cin, cout, has_down):
    Wp = W + 2
    D = Wp + 1
    F = (H + 2) * Wp
    S0 = F + 6 * D
    c2, c4 = cout // 2, cout // 4
    n1 = float(H * W * (cin // GROUPS))
    n2 = float(H * W * (c2 // GROUPS))
    n3 = float(H * W * (c4 // GROUPS))
    kernel = functools.partial(_convblock_kernel, H=H, W=W,
                               n1=n1, n2=n2, n3=n3, has_down=has_down)
    in_specs = [
        pl.BlockSpec((1, S0, cin), lambda b: (b, 0, 0)),
        _full_spec((S0, 1)),
        _full_spec((1, cin)), _full_spec((1, cin)), _full_spec((cin, cin)),
        _full_spec((9 * cin, c2)),
        _full_spec((1, c2)), _full_spec((1, c2)), _full_spec((c2, c2)),
        _full_spec((9 * c2, c4)),
        _full_spec((1, c4)), _full_spec((1, c4)), _full_spec((c4, c4)),
        _full_spec((9 * c4, c4)),
        _full_spec((c2, cout)), _full_spec((c4, cout)), _full_spec((c4, cout)),
    ]
    if has_down:
        in_specs += [_full_spec((1, cin)), _full_spec((1, cin)),
                     _full_spec((cin, cout))]
    fn = pl.pallas_call(
        kernel,
        out_shape=jax.ShapeDtypeStruct((B, F, cout), jnp.float32),
        grid=(B,),
        in_specs=in_specs,
        out_specs=pl.BlockSpec((1, F, cout), lambda b: (b, 0, 0)),
        compiler_params=pltpu.CompilerParams(dimension_semantics=("parallel",)),
    )
    return jax.jit(fn)


@functools.lru_cache(maxsize=None)
def _build_pw(B, npos, cin, cout, n, has_gn):
    kernel = functools.partial(_pw_kernel, n=n, has_gn=has_gn)
    in_specs = [
        pl.BlockSpec((1, npos, cin), lambda b: (b, 0, 0)),
        _full_spec((npos, 1)),
        _full_spec((cin, cout)), _full_spec((1, cout)),
    ]
    if has_gn:
        in_specs += [_full_spec((1, cout)), _full_spec((1, cout)),
                     _full_spec((cout, cout))]
    fn = pl.pallas_call(
        kernel,
        out_shape=jax.ShapeDtypeStruct((B, npos, cout), jnp.float32),
        grid=(B,),
        in_specs=in_specs,
        out_specs=pl.BlockSpec((1, npos, cout), lambda b: (b, 0, 0)),
        compiler_params=pltpu.CompilerParams(dimension_semantics=("parallel",)),
    )
    return jax.jit(fn)


# ----------------------------------------------------------------------------
# Activation layout helpers ("frame" = flat (H+2)*(W+2) with zero border ring)
# ----------------------------------------------------------------------------
def nhwc_to_frame(x):
    B, H, W, C = x.shape
    return jnp.pad(x, ((0, 0), (1, 1), (1, 1), (0, 0))).reshape(
        B, (H + 2) * (W + 2), C)


def frame_to_nhwc(xf, H, W):
    B, _, C = xf.shape
    return xf.reshape(B, H + 2, W + 2, C)[:, 1:1 + H, 1:1 + W, :]


# ----------------------------------------------------------------------------
# Op wrappers
# ----------------------------------------------------------------------------
def stem_forward(P, x):
    """7x7/s2 conv + GN + ReLU.  Stride-2 patches gathered on the 3ch input."""
    B, H, W, _ = x.shape
    k, pad, stride = 7, 3, 2
    Ho = (H + 2 * pad - k) // stride + 1
    Wo = (W + 2 * pad - k) // stride + 1
    xp = jnp.pad(x, ((0, 0), (pad, pad), (pad, pad), (0, 0)))
    cols = [xp[:, kh:kh + stride * Ho:stride, kw:kw + stride * Wo:stride, :]
            for kh in range(k) for kw in range(k)]
    patches = jnp.concatenate(cols, axis=-1).reshape(B, Ho * Wo, k * k * 3)
    out = _build_stem(B, Ho * Wo, k * k * 3, 64)(
        patches, P["conv1"]["w"], P["conv1"]["b"],
        P["bn1"]["g"], P["bn1"]["b"], _group_block(64))
    return out.reshape(B, Ho, Wo, 64), Ho, Wo


def conv_block(p, xf, H, W):
    """Fused ConvBlock on a frame-format activation (B, (H+2)*(W+2), Cin)."""
    B, _, cin = xf.shape
    cout = p["cout"]
    c2, c4 = cout // 2, cout // 4
    D = W + 3
    xs = jnp.pad(xf, ((0, 0), (3 * D, 3 * D), (0, 0)))   # flat zero slack rows
    has_down = "down" in p
    args = [xs, _interior_mask(H, W, 3 * D),
            p["bn1"]["g"], p["bn1"]["b"], _group_block(cin), p["conv1"],
            p["bn2"]["g"], p["bn2"]["b"], _group_block(c2), p["conv2"],
            p["bn3"]["g"], p["bn3"]["b"], _group_block(c4), p["conv3"],
            _placement(0, c2, cout), _placement(c2, c4, cout),
            _placement(c2 + c4, c4, cout)]
    if has_down:
        args += [p["bn4"]["g"], p["bn4"]["b"], p["down"]]
    return _build_convblock(B, H, W, cin, cout, has_down)(*args)


def pw_conv(xf, p, H, W, gn=None):
    """1x1 conv (+bias), optionally fused with GroupNorm + ReLU."""
    B, npos, cin = xf.shape
    cout = p["w"].shape[1]
    has_gn = gn is not None
    n = float(H * W * (cout // GROUPS)) if has_gn else 1.0
    args = [xf, _interior_mask(H, W, 0), p["w"], p["b"]]
    if has_gn:
        args += [gn["g"], gn["b"], _group_block(cout)]
    return _build_pw(B, npos, cin, cout, n, has_gn)(*args)


def avg_pool2(x):
    # TODO(synk): could be folded into the producing ConvBlock epilogue;
    # kept as a tiny plain-JAX reduction between Pallas stages.
    B, H, W, C = x.shape
    return x.reshape(B, H // 2, 2, W // 2, 2, C).mean(axis=(2, 4))


@functools.lru_cache(maxsize=None)
def _cubic_weight_matrix(in_size, out_size, a=-0.75):
    """PyTorch bicubic (align_corners=True) interpolation weights."""
    Wm = np.zeros((out_size, in_size), np.float64)
    scale = 0.0 if out_size == 1 else (in_size - 1) / (out_size - 1)

    def cc1(t):
        return ((a + 2.0) * t - (a + 3.0)) * t * t + 1.0

    def cc2(t):
        return ((a * t - 5.0 * a) * t + 8.0 * a) * t - 4.0 * a

    for i in range(out_size):
        real = i * scale
        idx = int(np.floor(real))
        t = real - idx
        ws = (cc2(t + 1.0), cc1(t), cc1(1.0 - t), cc2(2.0 - t))
        for kk in range(4):
            j = min(max(idx - 1 + kk, 0), in_size - 1)
            Wm[i, j] += ws[kk]
    return jnp.asarray(Wm, jnp.float32)


def bicubic_up2(x):
    # TODO(synk): bicubic align_corners=True upsample has no direct Pallas op;
    # reproduced exactly with precomputed separable weight matrices (tiny).
    B, h, w, C = x.shape
    Wh = _cubic_weight_matrix(h, 2 * h)
    Ww = _cubic_weight_matrix(w, 2 * w)
    y = jnp.einsum("Oh,bhwc->bOwc", Wh, x)
    y = jnp.einsum("Pw,bOwc->bOPc", Ww, y)
    return y


# ----------------------------------------------------------------------------
# Deterministic parameter construction
# ----------------------------------------------------------------------------
_KEY = [jax.random.PRNGKey(0)]


def _next_key():
    _KEY[0], k = jax.random.split(_KEY[0])
    return k


def gn_p(c):
    g = 1.0 + 0.05 * jax.random.normal(_next_key(), (1, c), jnp.float32)
    b = 0.05 * jax.random.normal(_next_key(), (1, c), jnp.float32)
    return {"g": g, "b": b}


def conv3x3_p(cin, cout):
    w = jax.random.normal(_next_key(), (9 * cin, cout), jnp.float32)
    return (w / math.sqrt(9 * cin)).astype(MXU_DTYPE)


def conv1x1_p(cin, cout):
    w = jax.random.normal(_next_key(), (cin, cout), jnp.float32) / math.sqrt(cin)
    b = 0.01 * jax.random.normal(_next_key(), (1, cout), jnp.float32)
    return {"w": w.astype(MXU_DTYPE), "b": b}


def stem_conv_p():
    w = jax.random.normal(_next_key(), (147, 64), jnp.float32) / math.sqrt(147)
    b = 0.01 * jax.random.normal(_next_key(), (1, 64), jnp.float32)
    return {"w": w.astype(MXU_DTYPE), "b": b}


def convblock_p(cin, cout):
    p = {"cout": cout,
         "conv1": conv3x3_p(cin, cout // 2),
         "conv2": conv3x3_p(cout // 2, cout // 4),
         "conv3": conv3x3_p(cout // 4, cout // 4),
         "bn1": gn_p(cin), "bn2": gn_p(cout // 2), "bn3": gn_p(cout // 4)}
    if cin != cout:
        p["bn4"] = gn_p(cin)
        w = jax.random.normal(_next_key(), (cin, cout), jnp.float32)
        p["down"] = (w / math.sqrt(cin)).astype(MXU_DTYPE)   # 1x1, bias=False
    return p


def hourglass_p(depth, feats):
    p = {}

    def gen(level):
        p[f"b1_{level}"] = convblock_p(feats, feats)
        p[f"b2_{level}"] = convblock_p(feats, feats)
        if level > 1:
            gen(level - 1)
        else:
            p[f"b2_plus_{level}"] = convblock_p(feats, feats)
        p[f"b3_{level}"] = convblock_p(feats, feats)

    gen(depth)
    return p


def hgfilter_p(opt):
    assert opt["hg_down"] == "ave_pool" and opt["norm"] == "group"
    P = {"conv1": stem_conv_p(), "bn1": gn_p(64)}
    P["conv2"] = convblock_p(64, 128)
    P["conv3"] = convblock_p(128, 128)
    P["conv4"] = convblock_p(128, 256)
    for i in range(opt["num_stack"]):
        P[f"m{i}"] = hourglass_p(opt["num_hourglass"], 256)
        P[f"top_m_{i}"] = convblock_p(256, 256)
        P[f"conv_last{i}"] = conv1x1_p(256, 256)
        P[f"bn_end{i}"] = gn_p(256)
        P[f"l{i}"] = conv1x1_p(256, opt["hourglass_dim"])
        if i < opt["num_stack"] - 1:
            P[f"bl{i}"] = conv1x1_p(256, 256)
            P[f"al{i}"] = conv1x1_p(opt["hourglass_dim"], 256)
    return P


# ----------------------------------------------------------------------------
# Forward pass (mirrors the PyTorch module, norm='group', hg_down='ave_pool')
# ----------------------------------------------------------------------------
def hourglass_fwd(p, depth, xf, H, W):
    def fwd(level, inp, H, W):
        up1 = conv_block(p[f"b1_{level}"], inp, H, W)
        low = nhwc_to_frame(avg_pool2(frame_to_nhwc(inp, H, W)))
        low1 = conv_block(p[f"b2_{level}"], low, H // 2, W // 2)
        if level > 1:
            low2 = fwd(level - 1, low1, H // 2, W // 2)
        else:
            low2 = conv_block(p[f"b2_plus_{level}"], low1, H // 2, W // 2)
        low3 = conv_block(p[f"b3_{level}"], low2, H // 2, W // 2)
        up2 = nhwc_to_frame(bicubic_up2(frame_to_nhwc(low3, H // 2, W // 2)))
        return up1 + up2

    return fwd(depth, xf, H, W)


def hgfilter_forward(P, x_nchw, opt):
    x = jnp.transpose(x_nchw, (0, 2, 3, 1))                 # NCHW -> NHWC
    y, Ho, Wo = stem_forward(P, x)                          # conv1/bn1/relu
    f = nhwc_to_frame(y)
    f = conv_block(P["conv2"], f, Ho, Wo)                   # 64 -> 128
    y = avg_pool2(frame_to_nhwc(f, Ho, Wo))                 # hg_down=ave_pool
    H2, W2 = Ho // 2, Wo // 2
    f = nhwc_to_frame(y)
    f = conv_block(P["conv3"], f, H2, W2)                   # 128 -> 128
    f = conv_block(P["conv4"], f, H2, W2)                   # 128 -> 256
    previous = f
    tmp_out = None
    for i in range(opt["num_stack"]):
        hg = hourglass_fwd(P[f"m{i}"], opt["num_hourglass"], previous, H2, W2)
        ll = conv_block(P[f"top_m_{i}"], hg, H2, W2)
        ll = pw_conv(ll, P[f"conv_last{i}"], H2, W2, gn=P[f"bn_end{i}"])
        tmp_out = pw_conv(ll, P[f"l{i}"], H2, W2)
        if i < opt["num_stack"] - 1:
            ll2 = pw_conv(ll, P[f"bl{i}"], H2, W2)
            to2 = pw_conv(tmp_out, P[f"al{i}"], H2, W2)
            previous = previous + ll2 + to2
    out = frame_to_nhwc(tmp_out, H2, W2)
    return jnp.transpose(out, (0, 3, 1, 2))                 # NHWC -> NCHW


# ----------------------------------------------------------------------------
if __name__ == "__main__":
    opt = {
        "num_stack": 2,
        "norm": "group",
        "hg_down": "ave_pool",
        "num_hourglass": 1,
        "hourglass_dim": 16,
    }
    params = hgfilter_p(opt)

    x = jax.random.normal(jax.random.PRNGKey(0), (2, 3, 16, 16), jnp.float32)
    out = jax.block_until_ready(hgfilter_forward(params, x, opt))

    assert out.shape == (2, opt["hourglass_dim"], 4, 4), out.shape
    assert bool(jnp.all(jnp.isfinite(out)))
    print("KERNEL_OK")
</pallas_src>

<mosaic_0001>
module attributes {stable_mosaic.version = 11 : i64} {
  func.func @_stem_kernel(%arg0: i32, %arg1: memref<1x64x147xf32, #tpu.memory_space<vmem>>, %arg2: memref<147x64xbf16, #tpu.memory_space<vmem>>, %arg3: memref<1x64xf32, #tpu.memory_space<vmem>>, %arg4: memref<1x64xf32, #tpu.memory_space<vmem>>, %arg5: memref<1x64xf32, #tpu.memory_space<vmem>>, %arg6: memref<64x64xf32, #tpu.memory_space<vmem>>, %arg7: memref<1x64x64xf32, #tpu.memory_space<vmem>>) attributes {dimension_semantics = [#tpu.dimension_semantics<parallel>], iteration_bounds = array<i64: 2>, scalar_prefetch = 0 : i64, scratch_operands = 0 : i64, tpu.core_type = #tpu.core_type<tc>, window_params = [{transform_indices = @transform_0, window_bounds = array<i64: 1, 64, 147>}, {pipeline_mode = #tpu.pipeline_mode<synchronous>, transform_indices = @transform_1, window_bounds = array<i64: 147, 64>}, {pipeline_mode = #tpu.pipeline_mode<synchronous>, transform_indices = @transform_2, window_bounds = array<i64: 1, 64>}, {pipeline_mode = #tpu.pipeline_mode<synchronous>, transform_indices = @transform_3, window_bounds = array<i64: 1, 64>}, {pipeline_mode = #tpu.pipeline_mode<synchronous>, transform_indices = @transform_4, window_bounds = array<i64: 1, 64>}, {pipeline_mode = #tpu.pipeline_mode<synchronous>, transform_indices = @transform_5, window_bounds = array<i64: 64, 64>}, {transform_indices = @transform_6, window_bounds = array<i64: 1, 64, 64>}]} {
    %c0 = arith.constant 0 : index
    %c0_0 = arith.constant 0 : index
    %c0_1 = arith.constant 0 : index
    %0 = vector.load %arg1[%c0, %c0_0, %c0_1] : memref<1x64x147xf32, #tpu.memory_space<vmem>>, vector<1x64x147xf32>
    %1 = vector.shape_cast %0 : vector<1x64x147xf32> to vector<64x147xf32>
    %2 = arith.truncf %1 : vector<64x147xf32> to vector<64x147xbf16>
    %c0_2 = arith.constant 0 : index
    %c0_3 = arith.constant 0 : index
    %3 = vector.load %arg2[%c0_2, %c0_3] : memref<147x64xbf16, #tpu.memory_space<vmem>>, vector<147x64xbf16>
    %cst = arith.constant dense<0.000000e+00> : vector<64x64xf32>
    %4 = tpu.matmul %2, %3, %cst {dimension_numbers = #tpu.dot_dimension_numbers<[1], [0], [0], [1], [0, 0, 1, 1], [], []>} : vector<64x147xbf16>, vector<147x64xbf16>, vector<64x64xf32> -> vector<64x64xf32>
    %c0_4 = arith.constant 0 : index
    %c0_5 = arith.constant 0 : index
    %5 = vector.load %arg3[%c0_4, %c0_5] : memref<1x64xf32, #tpu.memory_space<vmem>>, vector<1x64xf32>
    %6 = vector.broadcast %5 : vector<1x64xf32> to vector<64x64xf32>
    %7 = arith.addf %4, %6 : vector<64x64xf32>
    %c0_6 = arith.constant 0 : index
    %c0_7 = arith.constant 0 : index
    %8 = vector.load %arg4[%c0_6, %c0_7] : memref<1x64xf32, #tpu.memory_space<vmem>>, vector<1x64xf32>
    %c0_8 = arith.constant 0 : index
    %c0_9 = arith.constant 0 : index
    %9 = vector.load %arg5[%c0_8, %c0_9] : memref<1x64xf32, #tpu.memory_space<vmem>>, vector<1x64xf32>
    %c0_10 = arith.constant 0 : index
    %c0_11 = arith.constant 0 : index
    %10 = vector.load %arg6[%c0_10, %c0_11] : memref<64x64xf32, #tpu.memory_space<vmem>>, vector<64x64xf32>
    %cst_12 = arith.constant dense<0.000000e+00> : vector<64xf32>
    %11 = vector.multi_reduction <add>, %7, %cst_12 [0] : vector<64x64xf32> to vector<64xf32>
    %12 = vector.shape_cast %11 : vector<64xf32> to vector<1x64xf32>
    %cst_13 = arith.constant dense<0.000000e+00> : vector<1x64xf32>
    %13 = tpu.matmul %12, %10, %cst_13 {dimension_numbers = #tpu.dot_dimension_numbers<[1], [0], [0], [1], [0, 0, 1, 1], [], []>} : vector<1x64xf32>, vector<64x64xf32>, vector<1x64xf32> -> vector<1x64xf32>
    %cst_14 = arith.constant 1.280000e+02 : f32
    %14 = vector.broadcast %cst_14 : f32 to vector<1x64xf32>
    %15 = arith.divf %13, %14 : vector<1x64xf32>
    %16 = vector.broadcast %15 : vector<1x64xf32> to vector<64x64xf32>
    %17 = arith.subf %7, %16 : vector<64x64xf32>
    %18 = arith.mulf %17, %17 : vector<64x64xf32>
    %cst_15 = arith.constant dense<0.000000e+00> : vector<64xf32>
    %19 = vector.multi_reduction <add>, %18, %cst_15 [0] : vector<64x64xf32> to vector<64xf32>
    %20 = vector.shape_cast %19 : vector<64xf32> to vector<1x64xf32>
    %cst_16 = arith.constant dense<0.000000e+00> : vector<1x64xf32>
    %21 = tpu.matmul %20, %10, %cst_16 {dimension_numbers = #tpu.dot_dimension_numbers<[1], [0], [0], [1], [0, 0, 1, 1], [], []>} : vector<1x64xf32>, vector<64x64xf32>, vector<1x64xf32> -> vector<1x64xf32>
    %cst_17 = arith.constant 1.280000e+02 : f32
    %22 = vector.broadcast %cst_17 : f32 to vector<1x64xf32>
    %23 = arith.divf %21, %22 : vector<1x64xf32>
    %cst_18 = arith.constant 9.99999974E-6 : f32
    %24 = vector.broadcast %cst_18 : f32 to vector<1x64xf32>
    %25 = arith.addf %23, %24 : vector<1x64xf32>
    %26 = math.rsqrt %25 : vector<1x64xf32>
    %27 = vector.broadcast %26 : vector<1x64xf32> to vector<64x64xf32>
    %28 = arith.mulf %17, %27 : vector<64x64xf32>
    %29 = vector.broadcast %8 : vector<1x64xf32> to vector<64x64xf32>
    %30 = arith.mulf %28, %29 : vector<64x64xf32>
    %31 = vector.broadcast %9 : vector<1x64xf32> to vector<64x64xf32>
    %32 = arith.addf %30, %31 : vector<64x64xf32>
    %cst_19 = arith.constant 0.000000e+00 : f32
    %33 = vector.broadcast %cst_19 : f32 to vector<64x64xf32>
    %34 = arith.maximumf %32, %33 : vector<64x64xf32>
    %c0_20 = arith.constant 0 : index
    %c0_21 = arith.constant 0 : index
    %c0_22 = arith.constant 0 : index
    %35 = vector.load %arg7[%c0_20, %c0_21, %c0_22] : memref<1x64x64xf32, #tpu.memory_space<vmem>>, vector<1x64x64xf32>
    %36 = vector.shape_cast %35 : vector<1x64x64xf32> to vector<64x64xf32>
    %37 = vector.shape_cast %34 : vector<64x64xf32> to vector<1x64x64xf32>
    tpu.vector_store %arg7[%c0_20, %c0_21, %c0_22], %37 {strides = array<i32>} : memref<1x64x64xf32, #tpu.memory_space<vmem>>, vector<1x64x64xf32>,
    return
  }
  func.func @transform_0(%arg0: i32) -> (i32, i32, i32) {
    %c0_i32 = arith.constant 0 : i32
    %c0_i32_0 = arith.constant 0 : i32
    %c0_i32_1 = arith.constant 0 : i32
    return %arg0, %c0_i32, %c0_i32_0 : i32, i32, i32
  }
  func.func @transform_1(%arg0: i32) -> (i32, i32) {
    %c0_i32 = arith.constant 0 : i32
    %c0_i32_0 = arith.constant 0 : i32
    %c0_i32_1 = arith.constant 0 : i32
    return %c0_i32, %c0_i32_0 : i32, i32
  }
  func.func @transform_2(%arg0: i32) -> (i32, i32) {
    %c0_i32 = arith.constant 0 : i32
    %c0_i32_0 = arith.constant 0 : i32
    %c0_i32_1 = arith.constant 0 : i32
    return %c0_i32, %c0_i32_0 : i32, i32
  }
  func.func @transform_3(%arg0: i32) -> (i32, i32) {
    %c0_i32 = arith.constant 0 : i32
    %c0_i32_0 = arith.constant 0 : i32
    %c0_i32_1 = arith.constant 0 : i32
    return %c0_i32, %c0_i32_0 : i32, i32
  }
  func.func @transform_4(%arg0: i32) -> (i32, i32) {
    %c0_i32 = arith.constant 0 : i32
    %c0_i32_0 = arith.constant 0 : i32
    %c0_i32_1 = arith.constant 0 : i32
    return %c0_i32, %c0_i32_0 : i32, i32
  }
  func.func @transform_5(%arg0: i32) -> (i32, i32) {
    %c0_i32 = arith.constant 0 : i32
    %c0_i32_0 = arith.constant 0 : i32
    %c0_i32_1 = arith.constant 0 : i32
    return %c0_i32, %c0_i32_0 : i32, i32
  }
  func.func @transform_6(%arg0: i32) -> (i32, i32, i32) {
    %c0_i32 = arith.constant 0 : i32
    %c0_i32_0 = arith.constant 0 : i32
    %c0_i32_1 = arith.constant 0 : i32
    return %arg0, %c0_i32, %c0_i32_0 : i32, i32, i32
  }
}

</mosaic_0001>

<bundles_post_ra>
// kernel: tpu_custom_call.1
= control target key start
LH: loop header
LB: loop body
LE: loop exit
PB: predicated region body
PF: predicated region fallthrough
CT: control target
= control target key end

     0   :  { %11 = vsyncpa [#allocation3], 0  ;;  %s1452_s0 = inlined_call_operand.hbm [shape: f32[2,64,147], index: 0, kind: input, shape index: {}]   ;;  %s1453_s1 = inlined_call_operand.vmem [shape: bf16[147,64], index: 1, kind: input, shape index: {}]   ;;  %s1454_s2 = inlined_call_operand.vmem [shape: f32[1,64], index: 2, kind: input, shape index: {}]   ;;  %s1455_s3 = inlined_call_operand.vmem [shape: f32[1,64], index: 3, kind: input, shape index: {}]   ;;  %s1456_s4 = inlined_call_operand.vmem [shape: f32[1,64], index: 4, kind: input, shape index: {}]   ;;  %s1457_s5 = inlined_call_operand.vmem [shape: f32[64,64], index: 5, kind: input, shape index: {}]   ;;  %s1458_s6 = inlined_call_operand.hbm [shape: f32[2,64,64], index: 6, kind: output, shape index: {}]  }
   0x1   :  { %13 = vsyncpa [#allocation3 + $0x1], 0 }
   0x2   :  { %14 = vsyncpa [#allocation4], 0 }
   0x3   :  { %16 = vsyncpa [#allocation4 + $0x1], 0  ;;  %s1156_s21 = smov 0   ;;  %s1158_s22 = smov 0  }
   0x4   :  { %s1160_s23 = smov 0   ;;  %s1162_s24 = smov 0  }
   0x5 LB: > { %s1177_s25 = sadd.s32 4294967295, %s1108_s24   ;;  %s830_s26 = sadd.s32 4294967294, %s1108_s24   ;;  %s1108_s24 = sphi %s1162_s24, %s1471_s24   ;;  %s1104_s23 = sphi %s1160_s23, %s1470_s23   ;;  %s1100_s22 = sphi %s1158_s22, %s1469_s22   ;;  %s1096_s21 = sphi %s1156_s21, %s1468_s21  }
   0x6   : > { %s1181_s27 = sadd.s32 1, %s1108_s24   ;;  %s29_s28 = sadd.s32 1, %s1104_s23 }
   0x7   : > { %s26_s29 = ssub.s32 %s1108_s24, %s1181_s27  ;;  %p36_p0 = scmp.ne.s32.totalorder %s1104_s23, %s1100_s22 }
   0x8   : > { %p27_p1 = scmp.eq.s32.totalorder %s26_s29, 0  ;;  %p37_p2 = scmp.eq.s32.totalorder %s1108_s24, 0 }
   0x9   : > { %p42_p3 = scmp.ne.s32.totalorder %s1100_s22, %s1096_s21  ;;  %p43_p4 = scmp.eq.s32.totalorder %s1177_s25, 0 }
   0xa   : > { %s1193_s30 = scalar_select %p27_p1, %s1104_s23, %s29_s28  }
   0xb   : > { %p1195_p5 = por %p37_p2, %p36_p0  ;;  %p1199_p6 = por %p43_p4, %p42_p3 }
   0xc   : > { %p171_p7 = scmp.eq.s32.totalorder %s1177_s25, 1  ;;  %p177_p8 = scmp.eq.s32.totalorder %s830_s26, 1 }
   0xd   : > { %p957_p10 = scmp.lt.s32.totalorder %s1108_s24, 2  ;;  %s212_s11 = sand.u32 1, %s1104_s23  }
   0xe   : > { %p1206_p11 = por %p171_p7, %p36_p0  ;;  %p1210_p12 = por %p177_p8, %p42_p3 }
   0xf   : > { %s863_s12 = sshll.u32 %s1108_s24, 11  ;;  %s833_s13 = sshll.u32 %s212_s11, 7 }
  0x10   : > { %s1462_s9 = scalar_select %p1206_p11, 1, 0 }
  0x11   : > { %s1463_s10 = scalar_select %p1210_p12, 1, 0 }
  0x12   : > { %s1219_s16 = scalar_lea.hbm %s1452_s0, %s863_s12  ;;  %s216_s17 = scalar_lea.vmem [#allocation2], %s833_s13 }
  0x13   : > { %s223_s18 = sshll.u32 %s216_s17, 4  ;;  %p1223_p13 = pnand %p957_p10, %p1195_p5  ;;  %s1227_s18 = int_to_ptr.vmem [resolvable:$true] %s223_s18 }
  0x14   : > { %s1229_s20 = scalar_lea.sflag [#allocation3], %s212_s11  ;;  %s1012_s26 = scalar_lea.hbm %s1219_s16, 2048 }
  0x15   : > { %p1013_p0 = scmp.ne.s32.totalorder %s1219_s16, %s1012_s26  ;;  %p1014_p1 = pneg %p1223_p13 }
  0x16   : > { %s1017_s7 = scalar_lea.hbm %s1452_s0, 4096  ;;  %p1018_p4 = scmp.lt.u32.totalorder %s1219_s16, %s1452_s0 }
  0x17   : > { %p1015_p2 = pnand %p1014_p1, %p1013_p0  ;;  %p1019_p5 = scmp.lt.u32.totalorder %s1017_s7, %s1012_s26 }
  0x18   : > { %p1021_p8 = scmp.lt.u32.totalorder %s1012_s26, %s1219_s16 }
  0x19   : > { %p1016_p3 = pneg %p1015_p2  ;;  %p1020_p7 = por %p1019_p5, %p1018_p4 }
  0x1b   : > { %p1022_p10 = por %p1021_p8, %p1020_p7 }
  0x1d   : > { %p1023_p9 = pnand %p1022_p10, %p1016_p3 }
  0x1f   : > { %1026 = shalt.err (!%p1023_p9)
}
  0x20   : > { %s1027_s11 = scalar_lea.vmem %s1227_s18, 2048  ;;  %s1110_s14 = smov [#allocation2]  }
  0x21   : > { %p1028_p0 = scmp.ne.s32.totalorder %s1227_s18, %s1027_s11  ;;  %s1032_s15 = sshll.u32 %s1110_s14, 4  ;;  %s1033_s15 = int_to_ptr.vmem [resolvable:$false] %s1032_s15 }
  0x22   : > { %s1034_s17 = scalar_lea.vmem %s1033_s15, 4096  ;;  %p1035_p11 = scmp.lt.s32.totalorder %s1227_s18, %s1033_s15 }
  0x23   : > { %p1030_p2 = pnand %p1028_p0, %p1014_p1  ;;  %p1036_p4 = scmp.lt.s32.totalorder %s1034_s17, %s1027_s11 }
  0x25   : > { %p1031_p12 = pneg %p1030_p2  ;;  %p1037_p5 = por %p1036_p4, %p1035_p11 }
  0x27   : > { %p1038_p7 = pnand %p1037_p5, %p1031_p12 }
  0x29   : > { %1041 = shalt.err (!%p1038_p7)
}
  0x2a   : > { %s1111_s26 = smov 256   ;;  %s1112_s28 = smov 16  }
  0x2b   : > { %952 = dma.hbm_to_vmem [thread:$0]  (!%p1223_p13), %s1219_s16, 2048, %s1227_s18, %s1229_s20, %s1111_s26, %s1111_s26, %s1112_s28  }
  0x2c   : > { %p836_p9 = scmp.ge.s32.totalorder %s1108_s24, 1  ;;  %p231_p1 = scmp.lt.s32.totalorder %s1108_s24, 3 }
  0x2e   : > { %p232_p3 = pnand %p836_p9, %p231_p1 }
  0x2f   : > { %s1260_s29 = sand.u32 (!%p232_p3), 1, %s1100_s22  }
  0x30   : > { %235 = sbr.rel (%p232_p3) target bundleno = 854 (0x356), region = 44  ;;  %s837_s7 = sshll.u32 (!%p232_p3), %s1260_s29, 7 }
  0x31   : > { %s238_s12 = scalar_lea.sflag (!%p232_p3), [#allocation3], %s1260_s29  ;;  %s1264_s13 = scalar_lea.vmem (!%p232_p3), [#allocation2], %s837_s7 }
  0x37   : > { %1087 = dma.done.wait (%p1199_p6), %s238_s12, 2048  }
  0x38   : > { %1089 = vsyncadd (%p1199_p6), %s238_s12, 4294965248  ;;  %v1113_v0 = vmov 0   ;;  %v1000_v1 = vld [vmem:[%s1453_s1] sm:$0xff]   ;;  %v1001_v2 = vld [vmem:[%s1453_s1 + $0x8] sm:$0xff]   ;;  %vm378_vm0 = vcmask 154624   ;;  %vm391_vm1 = vcmask 1040384  }
  0x39   : > { %398 = vmatprep.subr.bf16.mxu0 %v1113_v0  ;;  %v1002_v3 = vld [vmem:[%s1453_s1 + $0x10] sm:$0xff]   ;;  %v272_v4 = vld [vmem:[%s1264_s13 + $0x8] sm:$0xff]  ;;  %v1003_v5 = vld [vmem:[%s1453_s1 + $0x18] sm:$0xff]   ;;  %vm392_vm2 = vcmask 1041408   ;;  %v1114_v12 = vmov 65535   ;;  %v1115_v42 = vmov 0.0|0.0  }
  0x3a   : > { %399 = vmatpush1.bf16.msra.mxu0 %v1000_v1  ;;  %v274_v6 = vld [vmem:[%s1264_s13 + $0x18] sm:$0xff]  ;;  %v1004_v8 = vld [vmem:[%s1453_s1 + $0x20] sm:$0xff]   ;;  %v1005_v9 = vld [vmem:[%s1453_s1 + $0x28] sm:$0xff]   ;;  %v393_v13 = vsel %vm391_vm1, 4294967295, %v1114_v12  ;;  %921 = vmatprep.subr.bf16.mxu1 %v1115_v42  ;;  %vm1116_vm3 = vmmov 0   ;;  %v1117_v52 = vmov 0.0  }
  0x3b   : > { %400 = vmatprep.subr.bf16.mxu0 %v1113_v0  ;;  %v288_v7 = vpack.c.bf16 %v274_v6, %v272_v4  ;;  %v1006_v10 = vld [vmem:[%s1453_s1 + $0x30] sm:$0xff]   ;;  %v1007_v11 = vld [vmem:[%s1453_s1 + $0x38] sm:$0xff]   ;;  %v1008_v14 = vld [vmem:[%s1453_s1 + $0x40] sm:$0xff]   ;;  %v394_v16 = vsel %vm392_vm2, %v393_v13, 0  ;;  %899 = vmatprep.mubr.msk.f32.mxu1 %vm1116_vm3, %v1117_v52  ;;  %vm473_vm4 = vcmask 523264   ;;  %s864_s19 = sshll.u32 %s1177_s25, 10 }
  0x3c   : > { %v1009_v15 = vld [vmem:[%s1453_s1 + $0x48] ss:$0 sps:$4 sm:$0x33]   ;;  %v271_v18 = vld [vmem:[%s1264_s13] sm:$0xff]  ;;  %v273_v19 = vld [vmem:[%s1264_s13 + $0x10] sm:$0xff]  ;;  %s1398_s15 = scalar_lea.hbm %s1458_s6, %s864_s19  ;;  %s744_s25 = scalar_lea.sflag [#allocation4], %s1260_s29 }
  0x3d   : > { %850 = vmatprep.mubr.msk.bf16.mxu0 %vm378_vm0, %v288_v7  ;;  %v396_v17 = vand.u32 %v1009_v15, %v394_v16  ;;  %v276_v20 = vld [vmem:[%s1264_s13 + $0x28] sm:$0xff]  ;;  %v278_v21 = vld [vmem:[%s1264_s13 + $0x38] sm:$0xff]  ;;  %v287_v22 = vpack.c.bf16 %v273_v19, %v271_v18  ;;  %v275_v24 = vld [vmem:[%s1264_s13 + $0x20] sm:$0xff]  ;;  %p1465_p11 = scmp.ne.s32.totalorder %s1462_s9, 0  ;;  %s1118_s26 = smov [#allocation5]  }
  0x3e   : > { %401 = vmatpush1.bf16.msra.mxu0 %v1001_v2  ;;  %v290_v23 = vpack.c.bf16 %v278_v21, %v276_v20  ;;  %v277_v25 = vld [vmem:[%s1264_s13 + $0x30] sm:$0xff]  ;;  %v280_v26 = vld [vmem:[%s1264_s13 + $0x48] sm:$0xff]  ;;  %v282_v27 = vld [vmem:[%s1264_s13 + $0x58] sm:$0xff]  ;;  %s1046_s28 = sshll.u32 %s1118_s26, 4  ;;  %s1047_s28 = int_to_ptr.vmem [resolvable:$false] %s1046_s28 }
  0x3f   : > { %402 = vmatprep.subr.bf16.mxu0 %v1113_v0  ;;  %v289_v28 = vpack.c.bf16 %v277_v25, %v275_v24  ;;  %v292_v29 = vpack.c.bf16 %v282_v27, %v280_v26  ;;  %v279_v30 = vld [vmem:[%s1264_s13 + $0x40] sm:$0xff]  ;;  %v281_v31 = vld [vmem:[%s1264_s13 + $0x50] sm:$0xff]  ;;  %v284_v32 = vld [vmem:[%s1264_s13 + $0x68] sm:$0xff] }
  0x40   : > { %v286_v33 = vld [vmem:[%s1264_s13 + $0x78] sm:$0xff]  ;;  %v291_v34 = vpack.c.bf16 %v281_v31, %v279_v30  ;;  %v283_v36 = vld [vmem:[%s1264_s13 + $0x60] sm:$0xff]  ;;  %v285_v37 = vld [vmem:[%s1264_s13 + $0x70] sm:$0xff]  ;;  %s838_s13 = sshll.u32 %s1260_s29, 6 }
  0x41   : > { %v294_v35 = vpack.c.bf16 %v286_v33, %v284_v32  ;;  %v293_v38 = vpack.c.bf16 %v285_v37, %v283_v36  ;;  %v465_v39 = vld [vmem:[%s1457_s5] sm:$0xff]  ;;  %v466_v40 = vld [vmem:[%s1457_s5 + $0x8] sm:$0xff]  ;;  %v467_v43 = vld [vmem:[%s1457_s5 + $0x10] sm:$0xff]  ;;  %s269_s20 = scalar_lea.vmem [#allocation5], %s838_s13  ;;  %s1048_s13 = scalar_lea.vmem %s1047_s28, 2048 }
  0x42   : > { %403 = vmatpush1.bf16.msra.mxu0 %v1002_v3  ;;  %v1326_v41 = vpack.c.bf16 %v466_v40, %v465_v39  ;;  %v468_v44 = vld [vmem:[%s1457_s5 + $0x18] sm:$0xff]  ;;  %v469_v46 = vld [vmem:[%s1457_s5 + $0x20] sm:$0xff]  ;;  %v470_v47 = vld [vmem:[%s1457_s5 + $0x28] sm:$0xff]  ;;  %s757_s11 = sshll.u32 %s269_s20, 4  ;;  %s1400_s11 = int_to_ptr.vmem [resolvable:$true] %s757_s11 }
  0x43   : > { %404 = vmatprep.subr.bf16.mxu0 %v1113_v0  ;;  %v1337_v45 = vpack.c.bf16 %v468_v44, %v467_v43  ;;  %v1347_v48 = vpack.c.bf16 %v470_v47, %v469_v46  ;;  %v471_v49 = vld [vmem:[%s1457_s5 + $0x30] sm:$0xff]  ;;  %v472_v50 = vld [vmem:[%s1457_s5 + $0x38] sm:$0xff]  ;;  %v839_v57 = vld [vmem:[%s1454_s2] ss:$0 sm:$0xff]  ;;  %s1042_s17 = scalar_lea.vmem %s1400_s11, 1024  ;;  %p1049_p8 = scmp.lt.s32.totalorder %s1400_s11, %s1047_s28 }
  0x44   : > { %923 = vmatpush3.bf16.msra.mxu1 %v1326_v41  ;;  %v931_v51 = vpack.c.bf16 %v472_v50, %v471_v49  ;;  %p1043_p6 = scmp.ne.s32.totalorder %s1400_s11, %s1042_s17  ;;  %p1050_p10 = scmp.lt.s32.totalorder %s1048_s13, %s1042_s17 }
  0x45   : > { %924 = vmatprep.subr.bf16.mxu1 %v1115_v42 }
  0x46   : > { %405 = vmatpush1.bf16.msra.mxu0 %v1003_v5  ;;  %p1044_p12 = pnand %p1043_p6, %p1465_p11  ;;  %p1051_p0 = por %p1050_p10, %p1049_p8 }
  0x47   : > { %406 = vmatprep.subr.bf16.mxu0 %v1113_v0 }
  0x48   : > { %926 = vmatpush3.bf16.msra.mxu1 %v1337_v45  ;;  %p1045_p13 = pneg %p1044_p12 }
  0x49   : > { %927 = vmatprep.subr.bf16.mxu1 %v1115_v42 }
  0x4a   : > { %407 = vmatpush1.bf16.msra.mxu0 %v1004_v8  ;;  %p1052_p2 = pnand %p1051_p0, %p1045_p13 }
  0x4b   : > { %408 = vmatprep.subr.bf16.mxu0 %v1113_v0 }
  0x4c   : > { %929 = vmatpush3.bf16.msra.mxu1 %v1347_v48 }
  0x4d   : > { %930 = vmatprep.subr.bf16.mxu1 %v1115_v42 }
  0x4e   : > { %409 = vmatpush1.bf16.msra.mxu0 %v1005_v9 }
  0x4f   : > { %410 = vmatprep.subr.bf16.mxu0 %v1113_v0 }
  0x50   : > { %932 = vmatpush3.bf16.msra.mxu1 %v931_v51 }
  0x51   : > { %933 = vmatprep.subr.bf16.mxu1 %v1115_v42 }
  0x52   : > { %411 = vmatpush1.bf16.msra.mxu0 %v1006_v10 }
  0x53   : > { %412 = vmatprep.subr.bf16.mxu0 %v1113_v0 }
  0x56   : > { %413 = vmatpush1.bf16.msra.mxu0 %v1007_v11 }
  0x57   : > { %414 = vmatprep.subr.bf16.mxu0 %v1113_v0 }
  0x5a   : > { %415 = vmatpush1.bf16.msra.mxu0 %v1008_v14 }
  0x5b   : > { %416 = vmatprep.subr.bf16.mxu0 %v1113_v0 }
  0x5e   : > { %417 = vmatpush1.bf16.msra.mxu0 %v396_v17 }
  0x61   : > { %431 = vmatmul.mubr.bf16.vlgmr.msra.gmra.mrb[0].mxu0 %v287_v22 }
  0x62   : > { %851 = vmatprep.mubr.msk.bf16.mxu0 %vm378_vm0, %v290_v23 }
  0x69   : > { %439 = vmatmul.mubr.bf16.gmra.mrb[4].mxu0 %v289_v28 }
  0x6a   : > { %852 = vmatprep.mubr.msk.bf16.mxu0 %vm378_vm0, %v292_v29 }
  0x71   : > { %447 = vmatmul.mubr.bf16.gmra.mrb[8].mxu0 %v291_v34 }
  0x72   : > { %853 = vmatprep.mubr.msk.bf16.mxu0 %vm378_vm0, %v294_v35  ;;  %v570_v35 = vlaneseq }
  0x74   : > { %v571_v36 = vshrl.u32 %v570_v35, 7 }
  0x76   : > { %v572_v37 = vsub.s32 0, %v571_v36 }
  0x79   : > { %455 = vmatmul.mubr.bf16.gmra.mrb[12].mxu0 %v293_v38 }
 0x134   : > { %v432_v53 = vpop.f32.mrb[0].mxu0 }
 0x135   : > { %v434_v54 = vpop.f32.mrb[1].mxu0  ;;  %v433_v60 = vadd.f32 %v839_v57, %v432_v53 }
 0x136   : > { %v435_v55 = vpop.f32.mrb[2].mxu0 }
 0x137   : > { %v437_v56 = vpop.f32.mrb[3].mxu0  ;;  %v436_v58 = vadd.f32 %v839_v57, %v435_v55  ;;  %v474_v2 = vsel %vm473_vm4, %v433_v60, 0.0 }
 0x139   : > { %v475_v0 = vsel %vm473_vm4, %v436_v58, 0.0 }
 0x13a   : > { %v476_v5 = vadd.f32 %v475_v0, %v474_v2 }
 0x13c   : > { %v440_v59 = vpop.f32.mrb[4].mxu0 }
 0x13d   : > { %v441_v61 = vadd.f32 %v839_v57, %v440_v59  ;;  %v442_v62 = vpop.f32.mrb[5].mxu0 }
 0x13e   : > { %v443_v63 = vpop.f32.mrb[6].mxu0 }
 0x13f   : > { %v445_v1 = vpop.f32.mrb[7].mxu0  ;;  %v477_v3 = vsel %vm473_vm4, %v441_v61, 0.0  ;;  %v444_v4 = vadd.f32 %v839_v57, %v443_v63 }
 0x140   : > { %v478_v6 = vadd.f32 %v477_v3, %v476_v5 }
 0x141   : > { %v479_v8 = vsel %vm473_vm4, %v444_v4, 0.0 }
 0x142   : > { %v480_v15 = vadd.f32 %v479_v8, %v478_v6 }
 0x144   : > { %v448_v7 = vpop.f32.mrb[8].mxu0 }
 0x145   : > { %v449_v9 = vadd.f32 %v839_v57, %v448_v7  ;;  %v450_v10 = vpop.f32.mrb[9].mxu0 }
 0x146   : > { %v451_v11 = vpop.f32.mrb[10].mxu0 }
 0x147   : > { %v481_v12 = vsel %vm473_vm4, %v449_v9, 0.0  ;;  %v452_v13 = vadd.f32 %v839_v57, %v451_v11  ;;  %v453_v14 = vpop.f32.mrb[11].mxu0 }
 0x148   : > { %v482_v16 = vadd.f32 %v481_v12, %v480_v15 }
 0x149   : > { %v483_v17 = vsel %vm473_vm4, %v452_v13, 0.0 }
 0x14a   : > { %v484_v21 = vadd.f32 %v483_v17, %v482_v16 }
 0x14c   : > { %v456_v18 = vpop.f32.mrb[12].mxu0 }
 0x14d   : > { %v457_v19 = vadd.f32 %v839_v57, %v456_v18  ;;  %v458_v20 = vpop.f32.mrb[13].mxu0 }
 0x14e   : > { %v459_v22 = vpop.f32.mrb[14].mxu0 }
 0x14f   : > { %v485_v23 = vsel %vm473_vm4, %v457_v19, 0.0  ;;  %v460_v24 = vadd.f32 %v839_v57, %v459_v22  ;;  %v461_v25 = vpop.f32.mrb[15].mxu0 }
 0x150   : > { %v486_v26 = vadd.f32 %v485_v23, %v484_v21  ;;  %v856_v21 = vld [vmem:[%s1455_s3] ss:$0 sm:$0xff] }
 0x151   : > { %v487_v27 = vsel %vm473_vm4, %v460_v24, 0.0 }
 0x152   : > { %v488_v28 = vadd.f32 %v487_v27, %v486_v26  ;;  %v857_v26 = vld [vmem:[%s1456_s4] ss:$0 sm:$0xff] }
 0x154   : > { %v489_v29 = vrot.slane %v488_v28, 4 }
 0x156   : > { %v490_v30 = vadd.f32 %v489_v29, %v488_v28 }
 0x158   : > { %v491_v31 = vrot.slane %v490_v30, 2 }
 0x15a   : > { %v492_v32 = vadd.f32 %v491_v31, %v490_v30 }
 0x15c   : > { %v493_v33 = vrot.slane %v492_v32, 1 }
 0x15e   : > { %v494_v34 = vadd.f32 %v493_v33, %v492_v32 }
 0x160   : > { %900 = vmatmul.mubr.msk.f32.vlgmr.msra.gmra.mrb[0].mxu1 %vm473_vm4, %v494_v34 }
 0x161   : > { %935 = vmatpush3.bf16.msra.mxu1 %v1326_v41  ;;  %918 = vmatprep.mubr.msk.f32.mxu1 %vm1116_vm3, %v1117_v52 }
 0x162   : > { %936 = vmatprep.subr.bf16.mxu1 %v1115_v42 }
 0x165   : > { %938 = vmatpush3.bf16.msra.mxu1 %v1337_v45 }
 0x166   : > { %939 = vmatprep.subr.bf16.mxu1 %v1115_v42 }
 0x169   : > { %941 = vmatpush3.bf16.msra.mxu1 %v1347_v48 }
 0x16a   : > { %942 = vmatprep.subr.bf16.mxu1 %v1115_v42 }
 0x16d   : > { %944 = vmatpush3.bf16.msra.mxu1 %v931_v51 }
 0x233   : > { %v564_v38 = vpop.f32.mrb[0].mxu1 }
 0x234   : > { %v569_v39 = vmul.f32 0.0078125, %v564_v38  ;;  %v901_v40 = vpop.f32.mrb[1].mxu1 }
 0x236   : > { %v573_v41 = vrot.slane %v569_v39, %v572_v37 }
 0x238   : > { %v574_v43 = vsub.f32 %v433_v60, %v573_v41  ;;  %v575_v44 = vsub.f32 %v436_v58, %v573_v41  ;;  %v576_v46 = vsub.f32 %v441_v61, %v573_v41  ;;  %v577_v47 = vsub.f32 %v444_v4, %v573_v41 }
 0x239   : > { %v578_v49 = vsub.f32 %v449_v9, %v573_v41  ;;  %v579_v53 = vsub.f32 %v452_v13, %v573_v41  ;;  %v580_v55 = vsub.f32 %v457_v19, %v573_v41  ;;  %v581_v60 = vsub.f32 %v460_v24, %v573_v41 }
 0x23a   : > { %v582_v45 = vmul.f32 %v574_v43, %v574_v43  ;;  %v583_v50 = vmul.f32 %v575_v44, %v575_v44  ;;  %v584_v52 = vmul.f32 %v576_v46, %v576_v46  ;;  %v585_v48 = vmul.f32 %v577_v47, %v577_v47 }
 0x23b   : > { %v586_v56 = vmul.f32 %v578_v49, %v578_v49  ;;  %v587_v58 = vmul.f32 %v579_v53, %v579_v53  ;;  %v588_v63 = vmul.f32 %v580_v55, %v580_v55  ;;  %v589_v2 = vmul.f32 %v581_v60, %v581_v60 }
 0x23c   : > { %v590_v42 = vsel %vm473_vm4, %v582_v45, 0.0  ;;  %v591_v51 = vsel %vm473_vm4, %v583_v50, 0.0  ;;  %v593_v57 = vsel %vm473_vm4, %v584_v52, 0.0  ;;  %v595_v61 = vsel %vm473_vm4, %v585_v48, 0.0 }
 0x23d   : > { %v592_v54 = vadd.f32 %v591_v51, %v590_v42  ;;  %v597_v0 = vsel %vm473_vm4, %v586_v56, 0.0  ;;  %v599_v3 = vsel %vm473_vm4, %v587_v58, 0.0  ;;  %v601_v5 = vsel %vm473_vm4, %v588_v63, 0.0 }
 0x23e   : > { %v603_v7 = vsel %vm473_vm4, %v589_v2, 0.0 }
 0x23f   : > { %v594_v59 = vadd.f32 %v593_v57, %v592_v54 }
 0x241   : > { %v596_v62 = vadd.f32 %v595_v61, %v594_v59 }
 0x243   : > { %v598_v1 = vadd.f32 %v597_v0, %v596_v62 }
 0x245   : > { %v600_v4 = vadd.f32 %v599_v3, %v598_v1 }
 0x247   : > { %v602_v6 = vadd.f32 %v601_v5, %v600_v4 }
 0x249   : > { %v604_v8 = vadd.f32 %v603_v7, %v602_v6 }
 0x24b   : > { %v605_v9 = vrot.slane %v604_v8, 4 }
 0x24d   : > { %v606_v10 = vadd.f32 %v605_v9, %v604_v8 }
 0x24f   : > { %v607_v11 = vrot.slane %v606_v10, 2 }
 0x251   : > { %v608_v12 = vadd.f32 %v607_v11, %v606_v10 }
 0x253   : > { %v609_v13 = vrot.slane %v608_v12, 1 }
 0x255   : > { %v610_v14 = vadd.f32 %v609_v13, %v608_v12 }
 0x257   : > { %919 = vmatmul.mubr.msk.f32.vlgmr.msra.gmra.mrb[2].mxu1 %vm473_vm4, %v610_v14 }
 0x32a   : > { %v680_v15 = vpop.f32.mrb[2].mxu1 }
 0x32b   : > { %v684_v16 = vmul.f32 0.0078125, %v680_v15  ;;  %v920_v17 = vpop.f32.mrb[3].mxu1 }
 0x32d   : > { %v685_v18 = vadd.f32 1e-05, %v684_v16 }
 0x32f   : > { %1010 = vrsqrt.f32 %v685_v18 }
 0x339   : > { %v1011_v19 = vpop.eup %1010 }
 0x33a   : > { %v690_v20 = vrot.slane %v1011_v19, %v572_v37 }
 0x33c   : > { %v691_v22 = vmul.f32 %v690_v20, %v574_v43  ;;  %v692_v23 = vmul.f32 %v690_v20, %v575_v44  ;;  %v693_v24 = vmul.f32 %v690_v20, %v576_v46  ;;  %v694_v25 = vmul.f32 %v690_v20, %v577_v47 }
 0x33d   : > { %v695_v27 = vmul.f32 %v690_v20, %v578_v49  ;;  %v696_v28 = vmul.f32 %v690_v20, %v579_v53  ;;  %v697_v29 = vmul.f32 %v690_v20, %v580_v55  ;;  %v698_v30 = vmul.f32 %v690_v20, %v581_v60 }
 0x33e   : > { %v705_v31 = vmul.f32 %v856_v21, %v691_v22  ;;  %v706_v32 = vmul.f32 %v856_v21, %v692_v23  ;;  %v707_v33 = vmul.f32 %v856_v21, %v693_v24  ;;  %v708_v34 = vmul.f32 %v856_v21, %v694_v25 }
 0x33f   : > { %v709_v35 = vmul.f32 %v856_v21, %v695_v27  ;;  %v710_v36 = vmul.f32 %v856_v21, %v696_v28  ;;  %v711_v37 = vmul.f32 %v856_v21, %v697_v29  ;;  %v712_v38 = vmul.f32 %v856_v21, %v698_v30 }
 0x340   : > { %v719_v39 = vadd.f32 %v857_v26, %v705_v31  ;;  %v720_v40 = vadd.f32 %v857_v26, %v706_v32  ;;  %v721_v41 = vadd.f32 %v857_v26, %v707_v33  ;;  %v722_v43 = vadd.f32 %v857_v26, %v708_v34 }
 0x341   : > { %v723_v44 = vadd.f32 %v857_v26, %v709_v35  ;;  %v724_v46 = vadd.f32 %v857_v26, %v710_v36  ;;  %v725_v47 = vadd.f32 %v857_v26, %v711_v37  ;;  %v726_v49 = vadd.f32 %v857_v26, %v712_v38 }
 0x342   : > { %v727_v45 = vmax.f32 %v719_v39, 0.0  ;;  %v728_v50 = vmax.f32 %v720_v40, 0.0  ;;  %v729_v52 = vmax.f32 %v721_v41, 0.0  ;;  %v730_v53 = vmax.f32 %v722_v43, 0.0 }
 0x343   : > { %v731_v48 = vmax.f32 %v723_v44, 0.0  ;;  %v732_v42 = vmax.f32 %v724_v46, 0.0  ;;  %v733_v51 = vmax.f32 %v725_v47, 0.0  ;;  %v734_v54 = vmax.f32 %v726_v49, 0.0 }
 0x344   : > { %735 = vst.msk [vmem:[%s269_s20] sm:$0xff] %vm473_vm4, %v727_v45  ;;  %736 = vst.msk [vmem:[%s269_s20 + $0x8] sm:$0xff] %vm473_vm4, %v728_v50 }
 0x345   : > { %737 = vst.msk [vmem:[%s269_s20 + $0x10] sm:$0xff] %vm473_vm4, %v729_v52  ;;  %738 = vst.msk [vmem:[%s269_s20 + $0x18] sm:$0xff] %vm473_vm4, %v730_v53 }
 0x346   : > { %739 = vst.msk [vmem:[%s269_s20 + $0x20] sm:$0xff] %vm473_vm4, %v731_v48  ;;  %740 = vst.msk [vmem:[%s269_s20 + $0x28] sm:$0xff] %vm473_vm4, %v732_v42 }
 0x347   : > { %741 = vst.msk [vmem:[%s269_s20 + $0x30] sm:$0xff] %vm473_vm4, %v733_v51  ;;  %742 = vst.msk [vmem:[%s269_s20 + $0x38] sm:$0xff] %vm473_vm4, %v734_v54 }
 0x348   : > { %1055 = shalt.err (!%p1052_p2)
}
 0x349   : > { %s1056_s7 = scalar_lea.hbm %s1398_s15, 1024  ;;  %s1060_s18 = scalar_lea.hbm %s1458_s6, 2048 }
 0x34a   : > { %p1057_p4 = scmp.ne.s32.totalorder %s1398_s15, %s1056_s7  ;;  %p1061_p9 = scmp.lt.u32.totalorder %s1398_s15, %s1458_s6 }
 0x34b   : > { %p1062_p1 = scmp.lt.u32.totalorder %s1060_s18, %s1056_s7  ;;  %p1064_p6 = scmp.lt.u32.totalorder %s1056_s7, %s1398_s15 }
 0x34c   : > { %p1058_p5 = pnand %p1057_p4, %p1465_p11 }
 0x34d   : > { %p1063_p3 = por %p1062_p1, %p1061_p9 }
 0x34e   : > { %p1059_p7 = pneg %p1058_p5 }
 0x34f   : > { %p1065_p12 = por %p1064_p6, %p1063_p3 }
 0x351   : > { %p1066_p13 = pnand %p1065_p12, %p1059_p7 }
 0x353   : > { %1069 = shalt.err (!%p1066_p13)
}
 0x354   : > { %s1119_s14 = smov 128   ;;  %s1120_s8 = smov 8  }
 0x355   : > { %947 = dma.vmem_to_hbm [thread:$0]  (%p1465_p11), %s1400_s11, 1024, %s1398_s15, %s744_s25, %s1119_s14, %s1119_s14, %s1120_s8  }
 0x356 PF: > { %s772_s17 = sand.u32 1, %s1096_s21   ;;  %p1466_p8 = scmp.ne.s32.totalorder %s1463_s10, 0 }
 0x357   : > { %p1467_p10 = scmp.ge.s32.totalorder %s1108_s24, 2  ;;  %s773_s26 = scalar_lea.sflag [#allocation4], %s772_s17 }
 0x359   : > { %p954_p0 = pnand %p1467_p10, %p1466_p8 }
 0x35b   : > { %1091 = dma.done.wait (!%p954_p0), %s773_s26, 1024  }
 0x35c   : > { %1093 = vsyncadd (!%p954_p0), %s773_s26, 4294966272  ;;  %p19_p2 = scmp.ge.s32.totalorder %s1181_s27, 4   ;;  %s1468_s21 = smov %s1100_s22 }
 0x35d   : > { %s1469_s22 = smov %s1104_s23  ;;  %s1470_s23 = smov %s1193_s30 }
 0x35e   : > { %s1471_s24 = smov %s1181_s27  ;;  %21 = sbr.rel (!%p19_p2) target bundleno = 5 (0x5), region = 89 }
 0x365   :  { %778 = vsyncpa [#allocation3], 1 }
 0x366   :  { %780 = vsyncpa [#allocation3 + $0x1], 1 }
 0x367   :  { %781 = vsyncpa [#allocation4], 1 }
 0x368   :  { %783 = vsyncpa [#allocation4 + $0x1], 1 }

</bundles_post_ra>
